<compile_context>
chip_gen: v7x
topology: tpu7x:2x2x1
jax: 0.10.0
libtpu: 0.0.40
codegen_flags: <defaults>
</compile_context>

<pallas_src>
import jax
import jax.numpy as jnp
from jax.experimental import pallas as pl
from jax.experimental.pallas import tpu as pltpu

NUM_CLASSES = 10
WIDE = 128          # lane-dense padded width for all hidden/output activations
_NEG_BIG = -1e30    # mask value for padded logit lanes (exp underflows to 0)


def _round_up(x, m):
    return ((x + m - 1) // m) * m


def _sigmoid(x):
    # sigmoid(x) == 0.5 * tanh(0.5 * x) + 0.5  -> single EUP push per element
    return 0.5 * jnp.tanh(0.5 * x) + 0.5


def mlp_kernel(x_ref, w0_ref, w1_ref, ws_ref, b_ref, out_ref):
    # layer 0: [TB, image_size] @ [image_size, 128], bf16 operands, f32 acc
    h = jnp.dot(x_ref[...].astype(jnp.bfloat16), w0_ref[...],
                preferred_element_type=jnp.float32) + b_ref[0:1, :]
    h = _sigmoid(h)

    # layer 1: [TB,128] @ [128,128] (output cols 64: are zero padding)
    h = jnp.dot(h.astype(jnp.bfloat16), w1_ref[...],
                preferred_element_type=jnp.float32) + b_ref[1:2, :]
    h = _sigmoid(h)

    # layers 2..4: padded bf16 [128,128] weights (real block in the top-left
    # corner); padded input lanes hit exactly-zero weight rows.
    for i in range(3):
        h = jnp.dot(h.astype(jnp.bfloat16), ws_ref[i],
                    preferred_element_type=jnp.float32) + b_ref[2 + i:3 + i, :]
        h = _sigmoid(h)

    # layer 5 (no activation): lane-dense [TB,128] logits, cols 10: are padding
    logits = jnp.dot(h.astype(jnp.bfloat16), ws_ref[3],
                     preferred_element_type=jnp.float32) + b_ref[5:6, :]

    # masked, numerically stable log_softmax over the first NUM_CLASSES lanes
    # (all reduction math kept in f32; only the final store is bf16)
    col = jax.lax.broadcasted_iota(jnp.int32, logits.shape, 1)
    logits = jnp.where(col < NUM_CLASSES, logits, _NEG_BIG)
    m = jnp.max(logits, axis=1, keepdims=True)
    s = logits - m
    lse = jnp.log(jnp.sum(jnp.exp(s), axis=1, keepdims=True))
    out_ref[...] = (s - lse).astype(out_ref.dtype)


def prepare_params(params):
    """One-time packing: transpose to [in,out], cast to bf16, zero-pad, stack."""
    (w0, b0), (w1, b1), (w2, b2), (w3, b3), (w4, b4), (w5, b5) = params

    w0_t = jnp.asarray(w0, jnp.float32).T.astype(jnp.bfloat16)   # [image, 128]

    w1_p = jnp.zeros((128, WIDE), jnp.bfloat16)
    w1_p = w1_p.at[:, :64].set(jnp.asarray(w1, jnp.float32).T.astype(jnp.bfloat16))

    ws = jnp.zeros((4, WIDE, WIDE), jnp.float32)
    ws = ws.at[0, :64, :NUM_CLASSES].set(jnp.asarray(w2, jnp.float32).T)
    ws = ws.at[1, :NUM_CLASSES, :NUM_CLASSES].set(jnp.asarray(w3, jnp.float32).T)
    ws = ws.at[2, :NUM_CLASSES, :NUM_CLASSES].set(jnp.asarray(w4, jnp.float32).T)
    ws = ws.at[3, :NUM_CLASSES, :NUM_CLASSES].set(jnp.asarray(w5, jnp.float32).T)
    ws = ws.astype(jnp.bfloat16)   # padded rows stay exactly zero in bf16

    bs = jnp.zeros((8, WIDE), jnp.float32)
    bs = bs.at[0, :128].set(jnp.asarray(b0, jnp.float32))
    bs = bs.at[1, :64].set(jnp.asarray(b1, jnp.float32))
    for i, bb in enumerate((b2, b3, b4, b5)):
        bs = bs.at[2 + i, :NUM_CLASSES].set(jnp.asarray(bb, jnp.float32))

    return w0_t, w1_p, ws, bs


def model_e_forward(x, packed, image_size, block_b=1024):
    w0_t, w1_p, ws, bs = packed

    # glue: flatten like x.view(-1, image_size); no standalone cast pass —
    # stream x in its native float dtype (bf16 producer halves the x read).
    xf = x.reshape(-1, image_size)
    if xf.dtype not in (jnp.dtype(jnp.float32), jnp.dtype(jnp.bfloat16)):
        xf = xf.astype(jnp.float32)
    b = xf.shape[0]

    # batch tile: multiple of 8, capped at block_b, chosen so the grid has
    # at least 2 steps (keeps both v7x TensorCores busy via the parallel axis)
    block_b = max(8, _round_up(block_b, 8))
    tb = min(block_b, _round_up(pl.cdiv(b, 2), 8))
    b_pad = max(_round_up(b, tb), 2 * tb)
    if b_pad != b:
        xf = jnp.pad(xf, ((0, b_pad - b), (0, 0)))

    # estimated double-buffered VMEM footprint; only raise the scoped limit
    # when the default (16 MiB on v5e) would be too small
    vmem_est = (2 * tb * image_size * xf.dtype.itemsize      # x tile, 2 bufs
                + 2 * tb * WIDE * 2                           # bf16 out, 2 bufs
                + 2 * (w0_t.nbytes + w1_p.nbytes + ws.nbytes + bs.nbytes))
    vmem_limit = None
    if vmem_est > (12 << 20):
        vmem_limit = min(int(vmem_est) + (4 << 20), 60 << 20)

    out = pl.pallas_call(
        mlp_kernel,
        out_shape=jax.ShapeDtypeStruct((b_pad, WIDE), jnp.bfloat16),
        grid=(b_pad // tb,),
        in_specs=[
            pl.BlockSpec((tb, image_size), lambda i: (i, 0)),   # x tile
            pl.BlockSpec(w0_t.shape, lambda i: (0, 0)),         # resident weights
            pl.BlockSpec(w1_p.shape, lambda i: (0, 0)),
            pl.BlockSpec(ws.shape, lambda i: (0, 0, 0)),
            pl.BlockSpec(bs.shape, lambda i: (0, 0)),
        ],
        out_specs=pl.BlockSpec((tb, WIDE), lambda i: (i, 0)),   # lane-dense store
        compiler_params=pltpu.CompilerParams(
            dimension_semantics=("parallel",),
            vmem_limit_bytes=vmem_limit),
    )(xf, w0_t, w1_p, ws, bs)

    return out[:b, :NUM_CLASSES].astype(jnp.float32)


def init_params(key, image_size):
    # deterministic synthetic init (shapes per ModelE.__init__)
    sizes = [(128, image_size), (64, 128), (10, 64), (10, 10), (10, 10), (10, 10)]
    params = []
    for i, (fan_out, fan_in) in enumerate(sizes):
        kw, kb = jax.random.split(jax.random.fold_in(key, i))
        bound = 1.0 / jnp.sqrt(fan_in)
        w = jax.random.uniform(kw, (fan_out, fan_in), jnp.float32, -bound, bound)
        b = jax.random.uniform(kb, (fan_out,), jnp.float32, -bound, bound)
        params.append((w, b))
    return params


def reference_forward(x, params, image_size):
    h = x.reshape(-1, image_size).astype(jnp.float32)
    for i, (w, b) in enumerate(params):
        h = h @ w.T + b
        if i < len(params) - 1:
            h = jax.nn.sigmoid(h)
    return jax.nn.log_softmax(h, axis=1)


if __name__ == "__main__":
    key = jax.random.PRNGKey(0)
    image_size = 16 * 16  # 256

    kx, kp = jax.random.split(key)
    # batch=2, channels=1, spatial=16x16 -> view(-1, 256) gives [2, 256]
    x = jax.random.normal(kx, (2, 1, 16, 16), dtype=jnp.float32)
    params = init_params(kp, image_size)

    packed = prepare_params(params)   # one-time: no per-call transposes/casts

    out = model_e_forward(x, packed, image_size)
    out = jax.block_until_ready(out)

    ref = reference_forward(x, params, image_size)
    assert out.shape == (2, 10)
    # bf16 matmul operands + bf16 output store loosen the tolerance
    assert jnp.allclose(out, ref, atol=3e-2, rtol=3e-2), \
        float(jnp.max(jnp.abs(out - ref)))

    print("KERNEL_OK")
</pallas_src>

<mosaic_0001>
module attributes {stable_mosaic.version = 11 : i64} {
  func.func @mlp_kernel(%arg0: i32, %arg1: memref<8x256xf32, #tpu.memory_space<vmem>>, %arg2: memref<256x128xbf16, #tpu.memory_space<vmem>>, %arg3: memref<128x128xbf16, #tpu.memory_space<vmem>>, %arg4: memref<4x128x128xbf16, #tpu.memory_space<vmem>>, %arg5: memref<8x128xf32, #tpu.memory_space<vmem>>, %arg6: memref<8x128xbf16, #tpu.memory_space<vmem>>) attributes {dimension_semantics = [#tpu.dimension_semantics<parallel>], iteration_bounds = array<i64: 2>, scalar_prefetch = 0 : i64, scratch_operands = 0 : i64, tpu.core_type = #tpu.core_type<tc>, window_params = [{transform_indices = @transform_0, window_bounds = array<i64: 8, 256>}, {pipeline_mode = #tpu.pipeline_mode<synchronous>, transform_indices = @transform_1, window_bounds = array<i64: 256, 128>}, {pipeline_mode = #tpu.pipeline_mode<synchronous>, transform_indices = @transform_2, window_bounds = array<i64: 128, 128>}, {pipeline_mode = #tpu.pipeline_mode<synchronous>, transform_indices = @transform_3, window_bounds = array<i64: 4, 128, 128>}, {pipeline_mode = #tpu.pipeline_mode<synchronous>, transform_indices = @transform_4, window_bounds = array<i64: 8, 128>}, {transform_indices = @transform_5, window_bounds = array<i64: 8, 128>}]} {
    %c0 = arith.constant 0 : index
    %c0_0 = arith.constant 0 : index
    %0 = vector.load %arg1[%c0, %c0_0] : memref<8x256xf32, #tpu.memory_space<vmem>>, vector<8x256xf32>
    %1 = arith.truncf %0 : vector<8x256xf32> to vector<8x256xbf16>
    %c0_1 = arith.constant 0 : index
    %c0_2 = arith.constant 0 : index
    %2 = vector.load %arg2[%c0_1, %c0_2] : memref<256x128xbf16, #tpu.memory_space<vmem>>, vector<256x128xbf16>
    %cst = arith.constant dense<0.000000e+00> : vector<8x128xf32>
    %3 = tpu.matmul %1, %2, %cst {dimension_numbers = #tpu.dot_dimension_numbers<[1], [0], [0], [1], [0, 0, 1, 1], [], []>} : vector<8x256xbf16>, vector<256x128xbf16>, vector<8x128xf32> -> vector<8x128xf32>
    %c0_3 = arith.constant 0 : index
    %c0_4 = arith.constant 0 : index
    %4 = vector.load %arg5[%c0_3, %c0_4] : memref<8x128xf32, #tpu.memory_space<vmem>>, vector<1x128xf32>
    %5 = vector.broadcast %4 : vector<1x128xf32> to vector<8x128xf32>
    %6 = arith.addf %3, %5 : vector<8x128xf32>
    %cst_5 = arith.constant 5.000000e-01 : f32
    %7 = vector.broadcast %cst_5 : f32 to vector<8x128xf32>
    %8 = arith.mulf %7, %6 : vector<8x128xf32>
    %9 = math.tanh %8 : vector<8x128xf32>
    %cst_6 = arith.constant 5.000000e-01 : f32
    %10 = vector.broadcast %cst_6 : f32 to vector<8x128xf32>
    %11 = arith.mulf %10, %9 : vector<8x128xf32>
    %cst_7 = arith.constant 5.000000e-01 : f32
    %12 = vector.broadcast %cst_7 : f32 to vector<8x128xf32>
    %13 = arith.addf %11, %12 : vector<8x128xf32>
    %14 = arith.truncf %13 : vector<8x128xf32> to vector<8x128xbf16>
    %c0_8 = arith.constant 0 : index
    %c0_9 = arith.constant 0 : index
    %15 = vector.load %arg3[%c0_8, %c0_9] : memref<128x128xbf16, #tpu.memory_space<vmem>>, vector<128x128xbf16>
    %cst_10 = arith.constant dense<0.000000e+00> : vector<8x128xf32>
    %16 = tpu.matmul %14, %15, %cst_10 {dimension_numbers = #tpu.dot_dimension_numbers<[1], [0], [0], [1], [0, 0, 1, 1], [], []>} : vector<8x128xbf16>, vector<128x128xbf16>, vector<8x128xf32> -> vector<8x128xf32>
    %c1 = arith.constant 1 : index
    %c0_11 = arith.constant 0 : index
    %17 = vector.load %arg5[%c1, %c0_11] : memref<8x128xf32, #tpu.memory_space<vmem>>, vector<1x128xf32>
    %18 = vector.broadcast %17 : vector<1x128xf32> to vector<8x128xf32>
    %19 = arith.addf %16, %18 : vector<8x128xf32>
    %cst_12 = arith.constant 5.000000e-01 : f32
    %20 = vector.broadcast %cst_12 : f32 to vector<8x128xf32>
    %21 = arith.mulf %20, %19 : vector<8x128xf32>
    %22 = math.tanh %21 : vector<8x128xf32>
    %cst_13 = arith.constant 5.000000e-01 : f32
    %23 = vector.broadcast %cst_13 : f32 to vector<8x128xf32>
    %24 = arith.mulf %23, %22 : vector<8x128xf32>
    %cst_14 = arith.constant 5.000000e-01 : f32
    %25 = vector.broadcast %cst_14 : f32 to vector<8x128xf32>
    %26 = arith.addf %24, %25 : vector<8x128xf32>
    %27 = arith.truncf %26 : vector<8x128xf32> to vector<8x128xbf16>
    %c0_15 = arith.constant 0 : index
    %c0_16 = arith.constant 0 : index
    %c0_17 = arith.constant 0 : index
    %28 = vector.load %arg4[%c0_15, %c0_16, %c0_17] : memref<4x128x128xbf16, #tpu.memory_space<vmem>>, vector<1x128x128xbf16>
    %29 = vector.shape_cast %28 : vector<1x128x128xbf16> to vector<128x128xbf16>
    %cst_18 = arith.constant dense<0.000000e+00> : vector<8x128xf32>
    %30 = tpu.matmul %27, %29, %cst_18 {dimension_numbers = #tpu.dot_dimension_numbers<[1], [0], [0], [1], [0, 0, 1, 1], [], []>} : vector<8x128xbf16>, vector<128x128xbf16>, vector<8x128xf32> -> vector<8x128xf32>
    %c2 = arith.constant 2 : index
    %c0_19 = arith.constant 0 : index
    %31 = vector.load %arg5[%c2, %c0_19] : memref<8x128xf32, #tpu.memory_space<vmem>>, vector<1x128xf32>
    %32 = vector.broadcast %31 : vector<1x128xf32> to vector<8x128xf32>
    %33 = arith.addf %30, %32 : vector<8x128xf32>
    %cst_20 = arith.constant 5.000000e-01 : f32
    %34 = vector.broadcast %cst_20 : f32 to vector<8x128xf32>
    %35 = arith.mulf %34, %33 : vector<8x128xf32>
    %36 = math.tanh %35 : vector<8x128xf32>
    %cst_21 = arith.constant 5.000000e-01 : f32
    %37 = vector.broadcast %cst_21 : f32 to vector<8x128xf32>
    %38 = arith.mulf %37, %36 : vector<8x128xf32>
    %cst_22 = arith.constant 5.000000e-01 : f32
    %39 = vector.broadcast %cst_22 : f32 to vector<8x128xf32>
    %40 = arith.addf %38, %39 : vector<8x128xf32>
    %41 = arith.truncf %40 : vector<8x128xf32> to vector<8x128xbf16>
    %c1_23 = arith.constant 1 : index
    %c0_24 = arith.constant 0 : index
    %c0_25 = arith.constant 0 : index
    %42 = vector.load %arg4[%c1_23, %c0_24, %c0_25] : memref<4x128x128xbf16, #tpu.memory_space<vmem>>, vector<1x128x128xbf16>
    %43 = vector.shape_cast %42 : vector<1x128x128xbf16> to vector<128x128xbf16>
    %cst_26 = arith.constant dense<0.000000e+00> : vector<8x128xf32>
    %44 = tpu.matmul %41, %43, %cst_26 {dimension_numbers = #tpu.dot_dimension_numbers<[1], [0], [0], [1], [0, 0, 1, 1], [], []>} : vector<8x128xbf16>, vector<128x128xbf16>, vector<8x128xf32> -> vector<8x128xf32>
    %c3 = arith.constant 3 : index
    %c0_27 = arith.constant 0 : index
    %45 = vector.load %arg5[%c3, %c0_27] : memref<8x128xf32, #tpu.memory_space<vmem>>, vector<1x128xf32>
    %46 = vector.broadcast %45 : vector<1x128xf32> to vector<8x128xf32>
    %47 = arith.addf %44, %46 : vector<8x128xf32>
    %cst_28 = arith.constant 5.000000e-01 : f32
    %48 = vector.broadcast %cst_28 : f32 to vector<8x128xf32>
    %49 = arith.mulf %48, %47 : vector<8x128xf32>
    %50 = math.tanh %49 : vector<8x128xf32>
    %cst_29 = arith.constant 5.000000e-01 : f32
    %51 = vector.broadcast %cst_29 : f32 to vector<8x128xf32>
    %52 = arith.mulf %51, %50 : vector<8x128xf32>
    %cst_30 = arith.constant 5.000000e-01 : f32
    %53 = vector.broadcast %cst_30 : f32 to vector<8x128xf32>
    %54 = arith.addf %52, %53 : vector<8x128xf32>
    %55 = arith.truncf %54 : vector<8x128xf32> to vector<8x128xbf16>
    %c2_31 = arith.constant 2 : index
    %c0_32 = arith.constant 0 : index
    %c0_33 = arith.constant 0 : index
    %56 = vector.load %arg4[%c2_31, %c0_32, %c0_33] : memref<4x128x128xbf16, #tpu.memory_space<vmem>>, vector<1x128x128xbf16>
    %57 = vector.shape_cast %56 : vector<1x128x128xbf16> to vector<128x128xbf16>
    %cst_34 = arith.constant dense<0.000000e+00> : vector<8x128xf32>
    %58 = tpu.matmul %55, %57, %cst_34 {dimension_numbers = #tpu.dot_dimension_numbers<[1], [0], [0], [1], [0, 0, 1, 1], [], []>} : vector<8x128xbf16>, vector<128x128xbf16>, vector<8x128xf32> -> vector<8x128xf32>
    %c4 = arith.constant 4 : index
    %c0_35 = arith.constant 0 : index
    %59 = vector.load %arg5[%c4, %c0_35] : memref<8x128xf32, #tpu.memory_space<vmem>>, vector<1x128xf32>
    %60 = vector.broadcast %59 : vector<1x128xf32> to vector<8x128xf32>
    %61 = arith.addf %58, %60 : vector<8x128xf32>
    %cst_36 = arith.constant 5.000000e-01 : f32
    %62 = vector.broadcast %cst_36 : f32 to vector<8x128xf32>
    %63 = arith.mulf %62, %61 : vector<8x128xf32>
    %64 = math.tanh %63 : vector<8x128xf32>
    %cst_37 = arith.constant 5.000000e-01 : f32
    %65 = vector.broadcast %cst_37 : f32 to vector<8x128xf32>
    %66 = arith.mulf %65, %64 : vector<8x128xf32>
    %cst_38 = arith.constant 5.000000e-01 : f32
    %67 = vector.broadcast %cst_38 : f32 to vector<8x128xf32>
    %68 = arith.addf %66, %67 : vector<8x128xf32>
    %69 = arith.truncf %68 : vector<8x128xf32> to vector<8x128xbf16>
    %c3_39 = arith.constant 3 : index
    %c0_40 = arith.constant 0 : index
    %c0_41 = arith.constant 0 : index
    %70 = vector.load %arg4[%c3_39, %c0_40, %c0_41] : memref<4x128x128xbf16, #tpu.memory_space<vmem>>, vector<1x128x128xbf16>
    %71 = vector.shape_cast %70 : vector<1x128x128xbf16> to vector<128x128xbf16>
    %cst_42 = arith.constant dense<0.000000e+00> : vector<8x128xf32>
    %72 = tpu.matmul %69, %71, %cst_42 {dimension_numbers = #tpu.dot_dimension_numbers<[1], [0], [0], [1], [0, 0, 1, 1], [], []>} : vector<8x128xbf16>, vector<128x128xbf16>, vector<8x128xf32> -> vector<8x128xf32>
    %c5 = arith.constant 5 : index
    %c0_43 = arith.constant 0 : index
    %73 = vector.load %arg5[%c5, %c0_43] : memref<8x128xf32, #tpu.memory_space<vmem>>, vector<1x128xf32>
    %74 = vector.broadcast %73 : vector<1x128xf32> to vector<8x128xf32>
    %75 = arith.addf %72, %74 : vector<8x128xf32>
    %76 = tpu.iota {dimensions = array<i32: 1>} : vector<8x128xi32>
    %c10_i32 = arith.constant 10 : i32
    %77 = vector.broadcast %c10_i32 : i32 to vector<8x128xi32>
    %78 = arith.cmpi slt, %76, %77 : vector<8x128xi32>
    %cst_44 = arith.constant -1.000000e+30 : f32
    %79 = vector.broadcast %cst_44 : f32 to vector<8x128xf32>
    %80 = arith.select %78, %75, %79 : vector<8x128xi1>, vector<8x128xf32>
    %cst_45 = arith.constant dense<0xFF800000> : vector<8xf32>
    %81 = vector.multi_reduction <maximumf>, %80, %cst_45 [1] : vector<8x128xf32> to vector<8xf32>
    %82 = vector.shape_cast %81 : vector<8xf32> to vector<8x1xf32>
    %83 = vector.broadcast %82 : vector<8x1xf32> to vector<8x128xf32>
    %84 = arith.subf %80, %83 : vector<8x128xf32>
    %85 = math.exp %84 : vector<8x128xf32>
    %cst_46 = arith.constant dense<0.000000e+00> : vector<8xf32>
    %86 = vector.multi_reduction <add>, %85, %cst_46 [1] : vector<8x128xf32> to vector<8xf32>
    %87 = vector.shape_cast %86 : vector<8xf32> to vector<8x1xf32>
    %88 = math.log %87 : vector<8x1xf32>
    %89 = vector.broadcast %88 : vector<8x1xf32> to vector<8x128xf32>
    %90 = arith.subf %84, %89 : vector<8x128xf32>
    %91 = arith.truncf %90 : vector<8x128xf32> to vector<8x128xbf16>
    %c0_47 = arith.constant 0 : index
    %c0_48 = arith.constant 0 : index
    %92 = vector.load %arg6[%c0_47, %c0_48] : memref<8x128xbf16, #tpu.memory_space<vmem>>, vector<8x128xbf16>
    tpu.vector_store %arg6[%c0_47, %c0_48], %91 {strides = array<i32>} : memref<8x128xbf16, #tpu.memory_space<vmem>>, vector<8x128xbf16>,
    return
  }
  func.func @transform_0(%arg0: i32) -> (i32, i32) {
    %c0_i32 = arith.constant 0 : i32
    %c0_i32_0 = arith.constant 0 : i32
    return %arg0, %c0_i32 : i32, i32
  }
  func.func @transform_1(%arg0: i32) -> (i32, i32) {
    %c0_i32 = arith.constant 0 : i32
    %c0_i32_0 = arith.constant 0 : i32
    %c0_i32_1 = arith.constant 0 : i32
    return %c0_i32, %c0_i32_0 : i32, i32
  }
  func.func @transform_2(%arg0: i32) -> (i32, i32) {
    %c0_i32 = arith.constant 0 : i32
    %c0_i32_0 = arith.constant 0 : i32
    %c0_i32_1 = arith.constant 0 : i32
    return %c0_i32, %c0_i32_0 : i32, i32
  }
  func.func @transform_3(%arg0: i32) -> (i32, i32, i32) {
    %c0_i32 = arith.constant 0 : i32
    %c0_i32_0 = arith.constant 0 : i32
    %c0_i32_1 = arith.constant 0 : i32
    %c0_i32_2 = arith.constant 0 : i32
    return %c0_i32, %c0_i32_0, %c0_i32_1 : i32, i32, i32
  }
  func.func @transform_4(%arg0: i32) -> (i32, i32) {
    %c0_i32 = arith.constant 0 : i32
    %c0_i32_0 = arith.constant 0 : i32
    %c0_i32_1 = arith.constant 0 : i32
    return %c0_i32, %c0_i32_0 : i32, i32
  }
  func.func @transform_5(%arg0: i32) -> (i32, i32) {
    %c0_i32 = arith.constant 0 : i32
    %c0_i32_0 = arith.constant 0 : i32
    return %arg0, %c0_i32 : i32, i32
  }
}

</mosaic_0001>

<bundles_post_ra>
// kernel: tpu_custom_call.1
= control target key start
LH: loop header
LB: loop body
LE: loop exit
PB: predicated region body
PF: predicated region fallthrough
CT: control target
= control target key end

     0   :  { %10 = vsyncpa [#allocation3], 0  ;;  %s2130_s0 = inlined_call_operand.hbm [shape: f32[16,256], index: 0, kind: input, shape index: {}]   ;;  %s2131_s1 = inlined_call_operand.hbm [shape: bf16[256,128], index: 1, kind: input, shape index: {}]   ;;  %s2132_s2 = inlined_call_operand.hbm [shape: bf16[128,128], index: 2, kind: input, shape index: {}]   ;;  %s2133_s3 = inlined_call_operand.hbm [shape: bf16[4,128,128], index: 3, kind: input, shape index: {}]   ;;  %s2134_s4 = inlined_call_operand.vmem [shape: f32[8,128], index: 4, kind: input, shape index: {}]   ;;  %s2135_s5 = inlined_call_operand.hbm [shape: bf16[16,128], index: 5, kind: output, shape index: {}]  }
   0x1   :  { %12 = vsyncpa [#allocation3 + $0x1], 0 }
   0x2   :  { %13 = vsyncpa [#allocation6], 0 }
   0x3   :  { %14 = vsyncpa [#allocation9], 0 }
   0x4   :  { %15 = vsyncpa [#allocation4], 0 }
   0x5   :  { %17 = vsyncpa [#allocation4 + $0x1], 0  ;;  %s1794_s18 = smov 0   ;;  %s1796_s19 = smov 0  }
   0x6   :  { %s1798_s20 = smov 0   ;;  %s1800_s21 = smov 0  }
   0x7 LB: > { %s1815_s22 = sadd.s32 4294967295, %s1753_s21   ;;  %s1165_s23 = sadd.s32 4294967294, %s1753_s21   ;;  %s1753_s21 = sphi %s1800_s21, %s2158_s21   ;;  %s1749_s20 = sphi %s1798_s20, %s2157_s20   ;;  %s1745_s19 = sphi %s1796_s19, %s2156_s19   ;;  %s1741_s18 = sphi %s1794_s18, %s2155_s18  }
   0x8   : > { %p43_p0 = scmp.ne.s32.totalorder %s1745_s19, %s1741_s18  ;;  %p2136_p1 = scmp.eq.s32.totalorder %s1815_s22, 0 }
   0x9   : > { %p157_p3 = scmp.eq.s32.totalorder %s1165_s23, 1  ;;  %p1166_p5 = scmp.ge.s32.totalorder %s1753_s21, 1 }
   0xa   : > { %p1824_p4 = por %p2136_p1, %p43_p0  ;;  %p164_p7 = scmp.lt.s32.totalorder %s1753_s21, 3 }
   0xb   : > { %p1829_p6 = por %p157_p3, %p43_p0  ;;  %s1755_s27 = smov [#allocation5]  }
   0xc   : > { %s2139_s24 = scalar_select %p1824_p4, 1, 0 }
   0xd   : > { %s2140_s25 = scalar_select %p1829_p6, 1, 0 }
   0xe   : > { %p1834_p8 = pnand %p1166_p5, %p164_p7  ;;  %s176_s28 = sshll.u32 %s1755_s27, 4  ;;  %s1838_s28 = int_to_ptr.vmem [resolvable:$true] %s176_s28 }
   0xf   : > { %s1756_s30 = smov [#allocation7]   ;;  %s1757_s7 = smov [#allocation8]  }
  0x10   : > { %s2141_s26 = scalar_select %p1834_p8, 1, 0 }
  0x11   : > { %p1430_p9 = pneg %p1834_p8  ;;  %s189_s6 = sshll.u32 %s1756_s30, 4  ;;  %s1849_s6 = int_to_ptr.vmem [resolvable:$true] %s189_s6 }
  0x12   : > { %s1851_s8 = sshll.u32 %s1757_s7, 4  ;;  %s1565_s11 = scalar_lea.hbm %s2131_s1, 2048  ;;  %s203_s8 = int_to_ptr.vmem [resolvable:$true] %s1851_s8 }
  0x13   : > { %p1845_p11 = pnand %p1430_p9, %p2136_p1  ;;  %p1566_p12 = scmp.ne.s32.totalorder %s2131_s1, %s1565_s11 }
  0x14   : > { %p1572_p5 = scmp.lt.u32.totalorder %s1565_s11, %s2131_s1 }
  0x15   : > { %p1861_p13 = pneg %p1845_p11 }
  0x17   : > { %p1568_p0 = pnand %p1861_p13, %p1566_p12 }
  0x19   : > { %p1569_p3 = pneg %p1568_p0 }
  0x1b   : > { %p1574_p7 = pnand %p1572_p5, %p1569_p3 }
  0x1d   : > { %1577 = shalt.err (!%p1574_p7)
}
  0x1e   : > { %s1578_s17 = scalar_lea.vmem %s1838_s28, 2048  ;;  %p1586_p2 = scmp.lt.s32.totalorder %s1838_s28, %s1838_s28 }
  0x1f   : > { %p1579_p9 = scmp.ne.s32.totalorder %s1838_s28, %s1578_s17  ;;  %p1587_p6 = scmp.lt.s32.totalorder %s1578_s17, %s1578_s17 }
  0x21   : > { %p1581_p10 = pnand %p1579_p9, %p1861_p13  ;;  %p1588_p12 = por %p1587_p6, %p1586_p2 }
  0x23   : > { %p1582_p1 = pneg %p1581_p10 }
  0x25   : > { %p1589_p0 = pnand %p1588_p12, %p1582_p1 }
  0x27   : > { %1592 = shalt.err (!%p1589_p0)
}
  0x28   : > { %s1758_s23 = smov 64   ;;  %s1759_s27 = smov 4  }
  0x29   : > { %1433 = dma.hbm_to_vmem [thread:$0]  (!%p1845_p11), %s2131_s1, 2048, %s1838_s28, [#allocation6], %s1758_s23, %s1758_s23, %s1759_s27  }
  0x2a   : > { %s1593_s11 = scalar_lea.hbm %s2132_s2, 1024 }
  0x2b   : > { %p1594_p1 = scmp.ne.s32.totalorder %s2132_s2, %s1593_s11  ;;  %p1600_p10 = scmp.lt.u32.totalorder %s1593_s11, %s2132_s2 }
  0x2d   : > { %p1596_p2 = pnand %p1594_p1, %p1861_p13 }
  0x2f   : > { %p1597_p6 = pneg %p1596_p2 }
  0x31   : > { %p1602_p3 = pnand %p1600_p10, %p1597_p6 }
  0x33   : > { %1605 = shalt.err (!%p1602_p3)
}
  0x34   : > { %s1606_s28 = scalar_lea.vmem %s1849_s6, 1024  ;;  %p1614_p12 = scmp.lt.s32.totalorder %s1849_s6, %s1849_s6 }
  0x35   : > { %p1607_p5 = scmp.ne.s32.totalorder %s1849_s6, %s1606_s28  ;;  %p1615_p0 = scmp.lt.s32.totalorder %s1606_s28, %s1606_s28 }
  0x37   : > { %p1609_p7 = pnand %p1607_p5, %p1861_p13  ;;  %p1616_p1 = por %p1615_p0, %p1614_p12 }
  0x39   : > { %p1610_p9 = pneg %p1609_p7 }
  0x3b   : > { %p1617_p2 = pnand %p1616_p1, %p1610_p9 }
  0x3d   : > { %1620 = shalt.err (!%p1617_p2)
}
  0x3e   : > { %1436 = dma.hbm_to_vmem [thread:$0]  (!%p1845_p11), %s2132_s2, 1024, %s1849_s6, [#allocation6], %s1758_s23, %s1758_s23, %s1759_s27  }
  0x3f   : > { %s1621_s10 = scalar_lea.hbm %s2133_s3, 4096 }
  0x40   : > { %p1622_p6 = scmp.ne.s32.totalorder %s2133_s3, %s1621_s10  ;;  %p1628_p5 = scmp.lt.u32.totalorder %s1621_s10, %s2133_s3 }
  0x42   : > { %p1624_p10 = pnand %p1622_p6, %p1861_p13 }
  0x44   : > { %p1625_p3 = pneg %p1624_p10 }
  0x46   : > { %p1630_p7 = pnand %p1628_p5, %p1625_p3 }
  0x48   : > { %1633 = shalt.err (!%p1630_p7)
}
  0x49   : > { %s1634_s16 = scalar_lea.vmem %s203_s8, 4096  ;;  %p1642_p1 = scmp.lt.s32.totalorder %s203_s8, %s203_s8 }
  0x4a   : > { %p1635_p9 = scmp.ne.s32.totalorder %s203_s8, %s1634_s16  ;;  %p1643_p2 = scmp.lt.s32.totalorder %s1634_s16, %s1634_s16 }
  0x4c   : > { %p1637_p12 = pnand %p1635_p9, %p1861_p13  ;;  %p1644_p4 = por %p1643_p2, %p1642_p1 }
  0x4e   : > { %p1638_p0 = pneg %p1637_p12 }
  0x50   : > { %p1645_p8 = pnand %p1644_p4, %p1638_p0 }
  0x52   : > { %1648 = shalt.err (!%p1645_p8)
}
  0x53   : > { %1439 = dma.hbm_to_vmem [thread:$0]  (!%p1845_p11), %s2133_s3, 4096, %s203_s8, [#allocation9], %s1758_s23, %s1758_s23, %s1759_s27  }
  0x54   : > { %s1934_s14 = sadd.s32 1, %s1753_s21   ;;  %s30_s17 = sadd.s32 1, %s1749_s20 }
  0x55   : > { %s27_s29 = ssub.s32 %s1753_s21, %s1934_s14  ;;  %p37_p8 = scmp.ne.s32.totalorder %s1749_s20, %s1745_s19 }
  0x56   : > { %p28_p4 = scmp.eq.s32.totalorder %s27_s29, 0  ;;  %p38_p13 = scmp.eq.s32.totalorder %s1753_s21, 0 }
  0x57   : > { %p1451_p6 = scmp.lt.s32.totalorder %s1753_s21, 2  ;;  %p2144_p3 = scmp.eq.s32.totalorder %s1815_s22, 1 }
  0x58   : > { %s1944_s30 = scalar_select %p28_p4, %s1749_s20, %s30_s17  }
  0x59   : > { %p39_p10 = por %p38_p13, %p37_p8  ;;  %p1948_p5 = por %p2144_p3, %p37_p8 }
  0x5a   : > { %s219_s9 = sand.u32 1, %s1749_s20   ;;  %s1246_s10 = sshll.u32 %s1753_s21, 8 }
  0x5b   : > { %s1171_s8 = sshll.u32 %s219_s9, 4  ;;  %s1957_s11 = scalar_lea.hbm %s2130_s0, %s1246_s10 }
  0x5c   : > { %s223_s12 = scalar_lea.vmem [#allocation2], %s1171_s8  ;;  %p1959_p11 = pnand %p1451_p6, %p39_p10 }
  0x5d   : > { %s231_s13 = sshll.u32 %s223_s12, 4  ;;  %s220_s16 = scalar_lea.sflag [#allocation3], %s219_s9  ;;  %s1963_s13 = int_to_ptr.vmem [resolvable:$true] %s231_s13 }
  0x5e   : > { %s1649_s6 = scalar_lea.hbm %s1957_s11, 256  ;;  %p1651_p9 = pneg %p1959_p11 }
  0x5f   : > { %p1650_p7 = scmp.ne.s32.totalorder %s1957_s11, %s1649_s6  ;;  %s1654_s17 = scalar_lea.hbm %s2130_s0, 512 }
  0x60   : > { %p1655_p1 = scmp.lt.u32.totalorder %s1957_s11, %s2130_s0  ;;  %p1656_p2 = scmp.lt.u32.totalorder %s1654_s17, %s1649_s6 }
  0x61   : > { %p1652_p12 = pnand %p1651_p9, %p1650_p7  ;;  %p1658_p8 = scmp.lt.u32.totalorder %s1649_s6, %s1957_s11 }
  0x62   : > { %p1657_p4 = por %p1656_p2, %p1655_p1 }
  0x63   : > { %p1653_p0 = pneg %p1652_p12 }
  0x64   : > { %p1659_p13 = por %p1658_p8, %p1657_p4 }
  0x66   : > { %p1660_p6 = pnand %p1659_p13, %p1653_p0 }
  0x68   : > { %1663 = shalt.err (!%p1660_p6)
}
  0x69   : > { %s1664_s9 = scalar_lea.vmem %s1963_s13, 256  ;;  %s1760_s23 = smov [#allocation2]  }
  0x6a   : > { %p1665_p10 = scmp.ne.s32.totalorder %s1963_s13, %s1664_s9  ;;  %s1669_s27 = sshll.u32 %s1760_s23, 4  ;;  %s1670_s27 = int_to_ptr.vmem [resolvable:$false] %s1669_s27 }
  0x6b   : > { %s1671_s12 = scalar_lea.vmem %s1670_s27, 512  ;;  %p1672_p12 = scmp.lt.s32.totalorder %s1963_s13, %s1670_s27 }
  0x6c   : > { %p1667_p3 = pnand %p1665_p10, %p1651_p9  ;;  %p1673_p1 = scmp.lt.s32.totalorder %s1671_s12, %s1664_s9 }
  0x6e   : > { %p1668_p7 = pneg %p1667_p3  ;;  %p1674_p2 = por %p1673_p1, %p1672_p12 }
  0x70   : > { %p1675_p4 = pnand %p1674_p2, %p1668_p7 }
  0x72   : > { %1678 = shalt.err (!%p1675_p4)
}
  0x73   : > { %1443 = dma.hbm_to_vmem [thread:$0]  (!%p1959_p11), %s1957_s11, 256, %s1963_s13, %s220_s16  }
  0x74   : > { %p2147_p0 = scmp.ne.s32.totalorder %s2141_s26, 0 }
  0x75   : > { %s1993_s6 = sand.u32 (!%p2147_p0), 1, %s1745_s19   ;;  %p2148_p9 = scmp.ne.s32.totalorder (!%p2147_p0), %s2139_s24, 0 }
  0x76   : > { %240 = sbr.rel (%p2147_p0) target bundleno = 1879 (0x757), region = 40  ;;  %s1175_s28 = sshll.u32 (!%p2147_p0), %s1993_s6, 4 }
  0x77   : > { %s243_s29 = scalar_lea.sflag (!%p2147_p0), [#allocation3], %s1993_s6  ;;  %s1997_s17 = scalar_lea.vmem (!%p2147_p0), [#allocation2], %s1175_s28 }
  0x7d   : > { %1724 = dma.done.wait (%p2148_p9), %s243_s29, 256  }
  0x7e   : > { %1726 = vsyncadd (%p2148_p9), %s243_s29, 4294967040  ;;  %p2149_p11 = scmp.eq.s32.totalorder %s1815_s22, 0 }
  0x80   : > { %1728 = dma.done.wait (%p2149_p11), [#allocation6], 3072   ;;  %p2150_p8 = pmov %p2149_p11 }
  0x82   : > { %1730 = vsyncadd (%p2150_p8), [#allocation6], 4294964224  ;;  %p2151_p13 = pmov %p2150_p8 }
  0x83   : > { %p2152_p6 = pmov %p2150_p8 }
  0x84   : > { %1732 = dma.done.wait (%p2151_p13), [#allocation9], 4096  }
  0x85   : > { %1734 = vsyncadd (%p2152_p6), [#allocation9], 4294963200  ;;  %v1761_v0 = vmov 0.0   ;;  %v1495_v1 = vld [vmem:[#allocation5 + $0x40] sm:$0xff]   ;;  %v1497_v3 = vld [vmem:[#allocation5 + $0x48] sm:$0xff]   ;;  %vm1762_vm0 = vmmov 0  }
  0x86   : > { %1314 = vmatprep.subr.bf16.mxu1 %v1761_v0  ;;  %v1496_v2 = vld [vmem:[#allocation5] sm:$0xff]   ;;  %1247 = vmatprep.subr.bf16.mxu0 %v1495_v1  ;;  %v1498_v4 = vld [vmem:[#allocation5 + $0x8] sm:$0xff]   ;;  %v1499_v5 = vld [vmem:[#allocation5 + $0x50] sm:$0xff]   ;;  %s1179_s28 = sshll.u32 %s1993_s6, 2  ;;  %s1243_s29 = sshll.u32 %s1815_s22, 6 }
  0x87   : > { %1248 = vmatpush3.bf16.msra.mxu0 %v1496_v2  ;;  %v1500_v6 = vld [vmem:[#allocation5 + $0x10] sm:$0xff]   ;;  %v1501_v7 = vld [vmem:[#allocation5 + $0x58] sm:$0xff]   ;;  %v1503_v9 = vld [vmem:[#allocation5 + $0x60] sm:$0xff]   ;;  %1330 = vmatprep.mubr.msk.bf16.mxu1 %vm1762_vm0, %v1761_v0  ;;  %s2086_s13 = scalar_lea.hbm %s2135_s5, %s1243_s29  ;;  %s1053_s15 = scalar_lea.sflag [#allocation4], %s1993_s6 }
  0x88   : > { %1249 = vmatprep.subr.bf16.mxu0 %v1497_v3  ;;  %v1502_v8 = vld [vmem:[#allocation5 + $0x18] sm:$0xff]   ;;  %v1504_v10 = vld [vmem:[#allocation5 + $0x20] sm:$0xff]   ;;  %v1505_v11 = vld [vmem:[#allocation5 + $0x68] sm:$0xff]   ;;  %s1763_s22 = smov [#allocation10]  }
  0x89   : > { %v287_v12 = vld [vmem:[%s1997_s17 + $0x8] sm:$0xff]  ;;  %v1511_v15 = vld [vmem:[#allocation7] sm:$0xff]   ;;  %v1507_v16 = vld [vmem:[#allocation5 + $0x70] sm:$0xff]   ;;  %s1683_s10 = sshll.u32 %s1763_s22, 4  ;;  %s1684_s10 = int_to_ptr.vmem [resolvable:$false] %s1683_s10 }
  0x8a   : > { %v1506_v13 = vld [vmem:[#allocation5 + $0x28] sm:$0xff]   ;;  %v289_v14 = vpack.c.bf16 %v287_v12, %v287_v12  ;;  %1315 = vmatpush3.bf16.msra.mxu1 %v1511_v15  ;;  %v1508_v18 = vld [vmem:[#allocation5 + $0x30] sm:$0xff]   ;;  %v1509_v19 = vld [vmem:[#allocation5 + $0x78] sm:$0xff]   ;;  %s1685_s8 = scalar_lea.vmem %s1684_s10, 128 }
  0x8b   : > { %1250 = vmatpush3.bf16.msra.mxu0 %v1498_v4  ;;  %v1512_v17 = vld [vmem:[#allocation7 + $0x8] sm:$0xff]   ;;  %1316 = vmatprep.subr.bf16.mxu1 %v1761_v0  ;;  %v1510_v20 = vld [vmem:[#allocation5 + $0x38] sm:$0xff]   ;;  %v286_v21 = vld [vmem:[%s1997_s17] sm:$0xff]  ;;  %s284_s17 = scalar_lea.vmem [#allocation10], %s1179_s28 }
  0x8c   : > { %1251 = vmatprep.subr.bf16.mxu0 %v1499_v5  ;;  %455 = vmatprep.mubr.bf16.mxu0 %v289_v14  ;;  %v288_v22 = vpack.c.bf16 %v286_v21, %v286_v21  ;;  %v1513_v23 = vld [vmem:[#allocation7 + $0x10] sm:$0xff]   ;;  %v1514_v24 = vld [vmem:[#allocation7 + $0x18] sm:$0xff]   ;;  %v1515_v25 = vld [vmem:[#allocation7 + $0x20] sm:$0xff]   ;;  %s1066_s24 = sshll.u32 %s284_s17, 4  ;;  %s2088_s24 = int_to_ptr.vmem [resolvable:$true] %s1066_s24 }
  0x8d   : > { %v1516_v26 = vld [vmem:[#allocation7 + $0x28] sm:$0xff]   ;;  %v1517_v27 = vld [vmem:[#allocation7 + $0x30] sm:$0xff]   ;;  %v1518_v28 = vld [vmem:[#allocation7 + $0x38] sm:$0xff]   ;;  %s1679_s16 = scalar_lea.vmem %s2088_s24, 64  ;;  %p1686_p12 = scmp.lt.s32.totalorder %s2088_s24, %s1684_s10 }
  0x8e   : > { %1317 = vmatpush3.bf16.msra.mxu1 %v1512_v17  ;;  %v1519_v29 = vld [vmem:[#allocation8] sm:$0xff]   ;;  %v1520_v30 = vld [vmem:[#allocation8 + $0x8] sm:$0xff]   ;;  %v1521_v31 = vld [vmem:[#allocation8 + $0x10] sm:$0xff]   ;;  %p1680_p10 = scmp.ne.s32.totalorder %s2088_s24, %s1679_s16  ;;  %p1687_p1 = scmp.lt.s32.totalorder %s1685_s8, %s1679_s16 }
  0x8f   : > { %1252 = vmatpush3.bf16.msra.mxu0 %v1500_v6  ;;  %1318 = vmatprep.subr.bf16.mxu1 %v1761_v0  ;;  %v1180_v33 = vld [vmem:[%s2134_s4] ss:$0 sm:$0xff]  ;;  %v1522_v44 = vld [vmem:[#allocation8 + $0x18] sm:$0xff]   ;;  %v1524_v46 = vld [vmem:[#allocation8 + $0x28] sm:$0xff]  }
  0x90   : > { %1253 = vmatprep.subr.bf16.mxu0 %v1501_v7  ;;  %v1523_v45 = vld [vmem:[#allocation8 + $0x20] sm:$0xff]   ;;  %v1525_v47 = vld [vmem:[#allocation8 + $0x30] sm:$0xff]   ;;  %v1526_v48 = vld [vmem:[#allocation8 + $0x38] sm:$0xff]   ;;  %p1681_p3 = pnand %p1680_p10, %p1948_p5  ;;  %p1688_p2 = por %p1687_p1, %p1686_p12 }
  0x91   : > { %v1527_v49 = vld [vmem:[#allocation8 + $0x40] sm:$0xff]   ;;  %v1528_v50 = vld [vmem:[#allocation8 + $0x48] sm:$0xff]   ;;  %v1529_v51 = vld [vmem:[#allocation8 + $0x50] sm:$0xff]  }
  0x92   : > { %1319 = vmatpush3.bf16.msra.mxu1 %v1513_v23  ;;  %v1197_v52 = vld [vmem:[%s2134_s4 + $0x1] ss:$0 sm:$0xff]  ;;  %v1530_v63 = vld [vmem:[#allocation8 + $0x58] sm:$0xff]   ;;  %v1532_v2 = vld [vmem:[#allocation8 + $0x68] sm:$0xff]   ;;  %p1682_p7 = pneg %p1681_p3 }
  0x93   : > { %1254 = vmatpush3.bf16.msra.mxu0 %v1502_v8  ;;  %1320 = vmatprep.subr.bf16.mxu1 %v1761_v0  ;;  %v1531_v1 = vld [vmem:[#allocation8 + $0x60] sm:$0xff]   ;;  %v1533_v3 = vld [vmem:[#allocation8 + $0x70] sm:$0xff]   ;;  %v1534_v4 = vld [vmem:[#allocation8 + $0x78] sm:$0xff]  }
  0x94   : > { %1255 = vmatprep.subr.bf16.mxu0 %v1503_v9  ;;  %v1535_v5 = vld [vmem:[#allocation8 + $0x80] sm:$0xff]   ;;  %v1536_v6 = vld [vmem:[#allocation8 + $0x88] sm:$0xff]   ;;  %v1537_v7 = vld [vmem:[#allocation8 + $0x90] sm:$0xff]   ;;  %p1689_p4 = pnand %p1688_p2, %p1682_p7 }
  0x95   : > { %v1206_v8 = vld [vmem:[%s2134_s4 + $0x2] ss:$0 sm:$0xff]  ;;  %v1540_v21 = vld [vmem:[#allocation8 + $0xa8] sm:$0xff]   ;;  %v1542_v23 = vld [vmem:[#allocation8 + $0xb8] sm:$0xff]  }
  0x96   : > { %1321 = vmatpush3.bf16.msra.mxu1 %v1514_v24  ;;  %v1543_v24 = vld [vmem:[#allocation8 + $0xc0] sm:$0xff]  }
  0x97   : > { %1256 = vmatpush3.bf16.msra.mxu0 %v1504_v10  ;;  %1322 = vmatprep.subr.bf16.mxu1 %v1761_v0 }
  0x98   : > { %1257 = vmatprep.subr.bf16.mxu0 %v1505_v11 }
  0x9a   : > { %1323 = vmatpush3.bf16.msra.mxu1 %v1515_v25  ;;  %v1544_v25 = vld [vmem:[#allocation8 + $0xc8] sm:$0xff]  }
  0x9b   : > { %1258 = vmatpush3.bf16.msra.mxu0 %v1506_v13  ;;  %1324 = vmatprep.subr.bf16.mxu1 %v1761_v0 }
  0x9c   : > { %1259 = vmatprep.subr.bf16.mxu0 %v1507_v16 }
  0x9e   : > { %1325 = vmatpush3.bf16.msra.mxu1 %v1516_v26  ;;  %v1545_v26 = vld [vmem:[#allocation8 + $0xd0] sm:$0xff]  }
  0x9f   : > { %1260 = vmatpush3.bf16.msra.mxu0 %v1508_v18  ;;  %1326 = vmatprep.subr.bf16.mxu1 %v1761_v0 }
  0xa0   : > { %1261 = vmatprep.subr.bf16.mxu0 %v1509_v19  ;;  %v1538_v19 = vld [vmem:[#allocation8 + $0x98] sm:$0xff]  }
  0xa2   : > { %1327 = vmatpush3.bf16.msra.mxu1 %v1517_v27  ;;  %v1215_v27 = vld [vmem:[%s2134_s4 + $0x3] ss:$0 sm:$0xff] }
  0xa3   : > { %1262 = vmatpush3.bf16.msra.mxu0 %v1510_v20  ;;  %1328 = vmatprep.subr.bf16.mxu1 %v1761_v0  ;;  %v1539_v20 = vld [vmem:[#allocation8 + $0xa0] sm:$0xff]  }
  0xa4   : > { %1334 = vmatprep.subr.bf16.mxu0 %v1761_v0 }
  0xa6   : > { %456 = vmatmul.mubr.bf16.vlgmr.msra.gmra.mrb[0].mxu0 %v288_v22  ;;  %1329 = vmatpush3.bf16.msra.mxu1 %v1518_v28  ;;  %v1541_v22 = vld [vmem:[#allocation8 + $0xb0] sm:$0xff]  }
  0xa7   : > { %1350 = vmatprep.mubr.msk.bf16.mxu0 %vm1762_vm0, %v1761_v0  ;;  %1354 = vmatprep.subr.bf16.mxu1 %v1761_v0 }
  0xa8   : > { %1335 = vmatpush3.bf16.msra.mxu0 %v1519_v29 }
  0xa9   : > { %1336 = vmatprep.subr.bf16.mxu0 %v1761_v0 }
  0xac   : > { %1337 = vmatpush3.bf16.msra.mxu0 %v1520_v30 }
  0xad   : > { %1338 = vmatprep.subr.bf16.mxu0 %v1761_v0 }
  0xb0   : > { %1339 = vmatpush3.bf16.msra.mxu0 %v1521_v31 }
  0xb1   : > { %1340 = vmatprep.subr.bf16.mxu0 %v1761_v0 }
  0xb4   : > { %1341 = vmatpush3.bf16.msra.mxu0 %v1522_v44 }
  0xb5   : > { %1342 = vmatprep.subr.bf16.mxu0 %v1761_v0 }
  0xb8   : > { %1343 = vmatpush3.bf16.msra.mxu0 %v1523_v45 }
  0xb9   : > { %1344 = vmatprep.subr.bf16.mxu0 %v1761_v0 }
  0xbc   : > { %1345 = vmatpush3.bf16.msra.mxu0 %v1524_v46 }
  0xbd   : > { %1346 = vmatprep.subr.bf16.mxu0 %v1761_v0 }
  0xc0   : > { %1347 = vmatpush3.bf16.msra.mxu0 %v1525_v47 }
  0xc1   : > { %1348 = vmatprep.subr.bf16.mxu0 %v1761_v0 }
  0xc4   : > { %1349 = vmatpush3.bf16.msra.mxu0 %v1526_v48 }
  0xc5   : > { %1374 = vmatprep.subr.bf16.mxu0 %v1761_v0 }
 0x179   : > { %v1263_v32 = vpop.f32.mrb[0].mxu0 }
 0x17a   : > { %v1264_v34 = vpop.f32.mrb[1].mxu0 }
 0x17b   : > { %v1265_v35 = vadd.f32 %v1264_v34, %v1263_v32  ;;  %v1266_v36 = vpop.f32.mrb[2].mxu0 }
 0x17c   : > { %v1267_v37 = vpop.f32.mrb[3].mxu0 }
 0x17d   : > { %v458_v38 = vadd.f32 %v1265_v35, %v1180_v33 }
 0x17f   : > { %v463_v39 = vmul.f32 0.5, %v458_v38  ;;  %v1546_v38 = vld [vmem:[#allocation8 + $0xd8] sm:$0xff]  }
 0x181   : > { %1551 = vtanh.f32 %v463_v39  ;;  %v1547_v39 = vld [vmem:[#allocation8 + $0xe0] sm:$0xff]  }
 0x18b   : > { %v1552_v40 = vpop.eup %1551 }
 0x18c   : > { %v465_v41 = vmul.f32 0.5, %v1552_v40  ;;  %v1548_v40 = vld [vmem:[#allocation8 + $0xe8] sm:$0xff]  }
 0x18e   : > { %v466_v42 = vadd.f32 0.5, %v465_v41  ;;  %v1549_v41 = vld [vmem:[#allocation8 + $0xf0] sm:$0xff]  }
 0x190   : > { %v467_v43 = vpack.c.bf16 %v466_v42, %v466_v42  ;;  %v1550_v42 = vld [vmem:[#allocation8 + $0xf8] sm:$0xff]  }
 0x192   : > { %1331 = vmatmul.mubr.bf16.vlgmr.msra.gmra.mrb[0].mxu1 %v467_v43  ;;  %v1224_v43 = vld [vmem:[%s2134_s4 + $0x4] ss:$0 sm:$0xff] }
 0x193   : > { %1370 = vmatprep.mubr.msk.bf16.mxu1 %vm1762_vm0, %v1761_v0  ;;  %1355 = vmatpush3.bf16.msra.mxu1 %v1527_v49 }
 0x194   : > { %1356 = vmatprep.subr.bf16.mxu1 %v1761_v0 }
 0x197   : > { %1357 = vmatpush3.bf16.msra.mxu1 %v1528_v50 }
 0x198   : > { %1358 = vmatprep.subr.bf16.mxu1 %v1761_v0 }
 0x19b   : > { %1359 = vmatpush3.bf16.msra.mxu1 %v1529_v51 }
 0x19c   : > { %1360 = vmatprep.subr.bf16.mxu1 %v1761_v0 }
 0x19f   : > { %1361 = vmatpush3.bf16.msra.mxu1 %v1530_v63 }
 0x1a0   : > { %1362 = vmatprep.subr.bf16.mxu1 %v1761_v0 }
 0x1a3   : > { %1363 = vmatpush3.bf16.msra.mxu1 %v1531_v1 }
 0x1a4   : > { %1364 = vmatprep.subr.bf16.mxu1 %v1761_v0 }
 0x1a7   : > { %1365 = vmatpush3.bf16.msra.mxu1 %v1532_v2 }
 0x1a8   : > { %1366 = vmatprep.subr.bf16.mxu1 %v1761_v0 }
 0x1ab   : > { %1367 = vmatpush3.bf16.msra.mxu1 %v1533_v3 }
 0x1ac   : > { %1368 = vmatprep.subr.bf16.mxu1 %v1761_v0 }
 0x1af   : > { %1369 = vmatpush3.bf16.msra.mxu1 %v1534_v4 }
 0x1b0   : > { %1394 = vmatprep.subr.bf16.mxu1 %v1761_v0 }
 0x265   : > { %v571_v53 = vpop.f32.mrb[0].mxu1 }
 0x266   : > { %v572_v54 = vadd.f32 %v1197_v52, %v571_v53  ;;  %v1332_v55 = vpop.f32.mrb[1].mxu1 }
 0x267   : > { %v574_v56 = vpop.f32.mrb[2].mxu1  ;;  %v1233_v55 = vld [vmem:[%s2134_s4 + $0x5] ss:$0 sm:$0xff] }
 0x268   : > { %v577_v57 = vmul.f32 0.5, %v572_v54  ;;  %v1333_v58 = vpop.f32.mrb[3].mxu1  ;;  %v1036_v54 = vlaneseq }
 0x26a   : > { %1553 = vtanh.f32 %v577_v57 }
 0x274   : > { %v1554_v59 = vpop.eup %1553 }
 0x275   : > { %v579_v60 = vmul.f32 0.5, %v1554_v59 }
 0x277   : > { %v580_v61 = vadd.f32 0.5, %v579_v60 }
 0x279   : > { %v581_v62 = vpack.c.bf16 %v580_v61, %v580_v61 }
 0x27b   : > { %1351 = vmatmul.mubr.bf16.vlgmr.msra.gmra.mrb[4].mxu0 %v581_v62 }
 0x27c   : > { %1390 = vmatprep.mubr.msk.bf16.mxu0 %vm1762_vm0, %v1761_v0  ;;  %1375 = vmatpush3.bf16.msra.mxu0 %v1535_v5 }
 0x27d   : > { %1376 = vmatprep.subr.bf16.mxu0 %v1761_v0 }
 0x280   : > { %1377 = vmatpush3.bf16.msra.mxu0 %v1536_v6 }
 0x281   : > { %1378 = vmatprep.subr.bf16.mxu0 %v1761_v0 }
 0x284   : > { %1379 = vmatpush3.bf16.msra.mxu0 %v1537_v7 }
 0x285   : > { %1380 = vmatprep.subr.bf16.mxu0 %v1761_v0 }
 0x288   : > { %1381 = vmatpush3.bf16.msra.mxu0 %v1538_v19 }
 0x289   : > { %1382 = vmatprep.subr.bf16.mxu0 %v1761_v0 }
 0x28c   : > { %1383 = vmatpush3.bf16.msra.mxu0 %v1539_v20 }
 0x28d   : > { %1384 = vmatprep.subr.bf16.mxu0 %v1761_v0 }
 0x290   : > { %1385 = vmatpush3.bf16.msra.mxu0 %v1540_v21 }
 0x291   : > { %1386 = vmatprep.subr.bf16.mxu0 %v1761_v0 }
 0x294   : > { %1387 = vmatpush3.bf16.msra.mxu0 %v1541_v22 }
 0x295   : > { %1388 = vmatprep.subr.bf16.mxu0 %v1761_v0 }
 0x298   : > { %1389 = vmatpush3.bf16.msra.mxu0 %v1542_v23 }
 0x34e   : > { %v685_v9 = vpop.f32.mrb[4].mxu0 }
 0x34f   : > { %v686_v10 = vadd.f32 %v1206_v8, %v685_v9  ;;  %v1352_v11 = vpop.f32.mrb[5].mxu0 }
 0x350   : > { %v688_v12 = vpop.f32.mrb[6].mxu0 }
 0x351   : > { %v691_v13 = vmul.f32 0.5, %v686_v10  ;;  %v1353_v14 = vpop.f32.mrb[7].mxu0 }
 0x353   : > { %1555 = vtanh.f32 %v691_v13 }
 0x35d   : > { %v1556_v15 = vpop.eup %1555 }
 0x35e   : > { %v693_v16 = vmul.f32 0.5, %v1556_v15 }
 0x360   : > { %v694_v17 = vadd.f32 0.5, %v693_v16 }
 0x362   : > { %v695_v18 = vpack.c.bf16 %v694_v17, %v694_v17 }
 0x364   : > { %1371 = vmatmul.mubr.bf16.vlgmr.msra.gmra.mrb[4].mxu1 %v695_v18 }
 0x365   : > { %1410 = vmatprep.mubr.msk.bf16.mxu1 %vm1762_vm0, %v1761_v0  ;;  %1395 = vmatpush3.bf16.msra.mxu1 %v1543_v24 }
 0x366   : > { %1396 = vmatprep.subr.bf16.mxu1 %v1761_v0 }
 0x369   : > { %1397 = vmatpush3.bf16.msra.mxu1 %v1544_v25 }
 0x36a   : > { %1398 = vmatprep.subr.bf16.mxu1 %v1761_v0 }
 0x36d   : > { %1399 = vmatpush3.bf16.msra.mxu1 %v1545_v26 }
 0x36e   : > { %1400 = vmatprep.subr.bf16.mxu1 %v1761_v0 }
 0x371   : > { %1401 = vmatpush3.bf16.msra.mxu1 %v1546_v38 }
 0x372   : > { %1402 = vmatprep.subr.bf16.mxu1 %v1761_v0 }
 0x375   : > { %1403 = vmatpush3.bf16.msra.mxu1 %v1547_v39 }
 0x376   : > { %1404 = vmatprep.subr.bf16.mxu1 %v1761_v0 }
 0x379   : > { %1405 = vmatpush3.bf16.msra.mxu1 %v1548_v40 }
 0x37a   : > { %1406 = vmatprep.subr.bf16.mxu1 %v1761_v0 }
 0x37d   : > { %1407 = vmatpush3.bf16.msra.mxu1 %v1549_v41 }
 0x37e   : > { %1408 = vmatprep.subr.bf16.mxu1 %v1761_v0  ;;  %v1037_v0 = vand.u32 127, %v1036_v54 }
 0x380   : > { %vm1038_vm1 = vcmp.lt.s32.totalorder %v1037_v0, 10 }
 0x381   : > { %1409 = vmatpush3.bf16.msra.mxu1 %v1550_v42 }
 0x437   : > { %v800_v28 = vpop.f32.mrb[4].mxu1 }
 0x438   : > { %v801_v29 = vadd.f32 %v1215_v27, %v800_v28  ;;  %v1372_v30 = vpop.f32.mrb[5].mxu1 }
 0x439   : > { %v803_v31 = vpop.f32.mrb[6].mxu1 }
 0x43a   : > { %v806_v32 = vmul.f32 0.5, %v801_v29  ;;  %v1373_v33 = vpop.f32.mrb[7].mxu1 }
 0x43c   : > { %1557 = vtanh.f32 %v806_v32 }
 0x446   : > { %v1558_v34 = vpop.eup %1557 }
 0x447   : > { %v808_v35 = vmul.f32 0.5, %v1558_v34 }
 0x449   : > { %v809_v36 = vadd.f32 0.5, %v808_v35 }
 0x44b   : > { %v810_v37 = vpack.c.bf16 %v809_v36, %v809_v36 }
 0x44d   : > { %1391 = vmatmul.mubr.bf16.vlgmr.msra.gmra.mrb[8].mxu0 %v810_v37 }
 0x520   : > { %v915_v44 = vpop.f32.mrb[8].mxu0 }
 0x521   : > { %v916_v45 = vadd.f32 %v1224_v43, %v915_v44  ;;  %v1392_v46 = vpop.f32.mrb[9].mxu0 }
 0x522   : > { %v918_v47 = vpop.f32.mrb[10].mxu0 }
 0x523   : > { %v921_v48 = vmul.f32 0.5, %v916_v45  ;;  %v1393_v49 = vpop.f32.mrb[11].mxu0 }
 0x525   : > { %1559 = vtanh.f32 %v921_v48 }
 0x52f   : > { %v1560_v50 = vpop.eup %1559 }
 0x530   : > { %v923_v51 = vmul.f32 0.5, %v1560_v50 }
 0x532   : > { %v924_v52 = vadd.f32 0.5, %v923_v51 }
 0x534   : > { %v925_v53 = vpack.c.bf16 %v924_v52, %v924_v52 }
 0x536   : > { %1411 = vmatmul.mubr.bf16.vlgmr.msra.gmra.mrb[8].mxu1 %v925_v53 }
 0x609   : > { %v1030_v56 = vpop.f32.mrb[8].mxu1 }
 0x60a   : > { %v1031_v57 = vadd.f32 %v1233_v55, %v1030_v56  ;;  %v1412_v58 = vpop.f32.mrb[9].mxu1 }
 0x60b   : > { %v1033_v59 = vpop.f32.mrb[10].mxu1 }
 0x60c   : > { %v1413_v60 = vpop.f32.mrb[11].mxu1  ;;  %v1039_v61 = vsel %vm1038_vm1, %v1031_v57, -1e+30 }
 0x60d   : > { %1040 = vmax.xlane.f32.xlu0 %v1039_v61 }
 0x69a   : > { %v1041_v62 = vpop.xlane.xlu0 %1040 }
 0x69b   : > { %v1042_v63 = vsub.f32 %v1039_v61, %v1041_v62 }
 0x69d   : > { %v1043_v1 = vmul.f32 1.442695, %v1042_v63 }
 0x69f   : > { %1561 = vpow2.f32 %v1043_v1 }
 0x6a9   : > { %v1562_v2 = vpop.eup %1561 }
 0x6aa   : > { %1045 = vadd.xlane.f32.xlu0 %v1562_v2 }
 0x737   : > { %v1046_v3 = vpop.xlane.xlu0 %1045 }
 0x738   : > { %1563 = vlog2.f32 %v1046_v3 }
 0x742   : > { %v1564_v4 = vpop.eup %1563 }
 0x743   : > { %v1048_v5 = vmul.f32 0.6931472, %v1564_v4 }
 0x745   : > { %v1049_v6 = vsub.f32 %v1042_v63, %v1048_v5 }
 0x747   : > { %v1050_v7 = vpack.c.bf16 %v1049_v6, %v1049_v6 }
 0x749   : > { %1051 = vst [vmem:[%s284_s17] sm:$0xf] %v1050_v7 }
 0x74a   : > { %1692 = shalt.err (!%p1689_p4)
}
 0x74b   : > { %s1693_s6 = scalar_lea.hbm %s2086_s13, 64  ;;  %s1697_s27 = scalar_lea.hbm %s2135_s5, 128 }
 0x74c   : > { %p1694_p0 = scmp.ne.s32.totalorder %s2086_s13, %s1693_s6  ;;  %p1698_p8 = scmp.lt.u32.totalorder %s2086_s13, %s2135_s5 }
 0x74d   : > { %p1699_p13 = scmp.lt.u32.totalorder %s1697_s27, %s1693_s6  ;;  %p1701_p10 = scmp.lt.u32.totalorder %s1693_s6, %s2086_s13 }
 0x74e   : > { %p1695_p9 = pnand %p1694_p0, %p1948_p5 }
 0x74f   : > { %p1700_p6 = por %p1699_p13, %p1698_p8 }
 0x750   : > { %p1696_p11 = pneg %p1695_p9 }
 0x751   : > { %p1702_p3 = por %p1701_p10, %p1700_p6 }
 0x753   : > { %p1703_p7 = pnand %p1702_p3, %p1696_p11 }
 0x755   : > { %1706 = shalt.err (!%p1703_p7)
}
 0x756   : > { %1428 = dma.vmem_to_hbm [thread:$0]  (%p1948_p5), %s2088_s24, 64, %s2086_s13, %s1053_s15  }
 0x757 PF: > { %s1078_s29 = sand.u32 1, %s1741_s18   ;;  %p2153_p12 = scmp.ne.s32.totalorder %s2140_s25, 0 }
 0x758   : > { %p2154_p1 = scmp.ge.s32.totalorder %s1753_s21, 2  ;;  %s1079_s17 = scalar_lea.sflag [#allocation4], %s1078_s29 }
 0x75a   : > { %p1445_p2 = pnand %p2154_p1, %p2153_p12 }
 0x75c   : > { %1736 = dma.done.wait (!%p1445_p2), %s1079_s17, 64  }
 0x75d   : > { %1738 = vsyncadd (!%p1445_p2), %s1079_s17, 4294967232  ;;  %p20_p4 = scmp.ge.s32.totalorder %s1934_s14, 4   ;;  %s2155_s18 = smov %s1745_s19 }
 0x75e   : > { %s2156_s19 = smov %s1749_s20  ;;  %s2157_s20 = smov %s1944_s30 }
 0x75f   : > { %s2158_s21 = smov %s1934_s14  ;;  %22 = sbr.rel (!%p20_p4) target bundleno = 7 (0x7), region = 100 }
 0x766   :  { %1084 = vsyncpa [#allocation3], 1 }
 0x767   :  { %1086 = vsyncpa [#allocation3 + $0x1], 1 }
 0x768   :  { %1087 = vsyncpa [#allocation6], 1 }
 0x769   :  { %1088 = vsyncpa [#allocation9], 1 }
 0x76a   :  { %1089 = vsyncpa [#allocation4], 1 }
 0x76b   :  { %1091 = vsyncpa [#allocation4 + $0x1], 1 }

</bundles_post_ra>
